<compile_context>
chip_gen: v6e
topology: v6e:2x2x1
jax: 0.10.0
libtpu: 0.0.40
codegen_flags: <defaults>
</compile_context>

<pallas_src>
import functools

import jax
import jax.numpy as jnp
from jax.experimental import pallas as pl
from jax.experimental.pallas import tpu as pltpu

LEAKY_SLOPE = 0.1
BN_EPS = 1e-5
ROW_TILE = 512  # rows per grid step for the plain matmul kernels (multiple of 8)


def _act(acc, act):
    if act == "relu":
        return jnp.maximum(acc, 0.0)
    if act == "leaky":
        return jnp.maximum(acc, LEAKY_SLOPE * acc)
    return acc


def _fold_bn(bn):
    scale = bn["gamma"] / jnp.sqrt(bn["var"] + BN_EPS)
    bias = bn["beta"] - bn["mean"] * scale
    return scale.astype(jnp.float32), bias.astype(jnp.float32)


def _row_tile(M):
    return M if M <= ROW_TILE else ROW_TILE


# ----------------------------------------------------------------------------
# Kernel A: out = act(x @ w_folded + bias [+ residual])
# ----------------------------------------------------------------------------
def _mm_bias_act_kernel(*refs, act, has_residual):
    if has_residual:
        x_ref, w_ref, b_ref, r_ref, o_ref = refs
    else:
        x_ref, w_ref, b_ref, o_ref = refs
    acc = jnp.dot(x_ref[...], w_ref[...], preferred_element_type=jnp.float32)
    acc = acc + b_ref[...]
    if has_residual:
        acc = acc + r_ref[...]
    o_ref[...] = _act(acc, act).astype(o_ref.dtype)


def _mm_bias_act_pallas(x2d, w, bias, residual, act):
    M, K = x2d.shape
    N = w.shape[1]
    tm = _row_tile(M)
    grid = (pl.cdiv(M, tm),)
    in_specs = [
        pl.BlockSpec((tm, K), lambda i: (i, 0)),
        pl.BlockSpec((K, N), lambda i: (0, 0)),
        pl.BlockSpec((1, N), lambda i: (0, 0)),
    ]
    args = [x2d, w, bias.reshape(1, N)]
    has_residual = residual is not None
    if has_residual:
        in_specs.append(pl.BlockSpec((tm, N), lambda i: (i, 0)))
        args.append(residual)
    return pl.pallas_call(
        functools.partial(_mm_bias_act_kernel, act=act, has_residual=has_residual),
        grid=grid,
        in_specs=in_specs,
        out_specs=pl.BlockSpec((tm, N), lambda i: (i, 0)),
        out_shape=jax.ShapeDtypeStruct((M, N), jnp.float32),
        compiler_params=pltpu.CompilerParams(dimension_semantics=("parallel",)),
    )(*args)


def _mm_bias_act_ref(x2d, w, bias, residual, act):
    acc = x2d @ w + bias.reshape(1, -1)
    if residual is not None:
        acc = acc + residual
    return _act(acc, act)


# ----------------------------------------------------------------------------
# Kernel B: fused "concat + 1x1 conv":  out = act(a @ wa + b @ wb + bias)
# ----------------------------------------------------------------------------
def _dual_mm_bias_act_kernel(a_ref, b_ref, wa_ref, wb_ref, bias_ref, o_ref, *, act):
    acc = jnp.dot(a_ref[...], wa_ref[...], preferred_element_type=jnp.float32)
    acc = acc + jnp.dot(b_ref[...], wb_ref[...], preferred_element_type=jnp.float32)
    acc = acc + bias_ref[...]
    o_ref[...] = _act(acc, act).astype(o_ref.dtype)


def conv4_dual(a, b, w, bn, *, stride=1, act="leaky", use_pallas=True):
    """(concat([a,b], -1) -> 1x1 conv -> BN -> act) without materializing the concat."""
    if stride > 1:
        a = a[:, ::stride, ::stride, :]
        b = b[:, ::stride, ::stride, :]
    n, h, wd_, ca = a.shape
    cb = b.shape[-1]
    cout = w.shape[1]
    scale, bias = _fold_bn(bn)
    wf = (w * scale[None, :]).astype(jnp.float32)
    wa, wb = wf[:ca], wf[ca:]
    a2 = a.reshape(-1, ca)
    b2 = b.reshape(-1, cb)
    if not use_pallas:
        y2 = _act(a2 @ wa + b2 @ wb + bias.reshape(1, -1), act)
        return y2.reshape(n, h, wd_, cout)
    M = a2.shape[0]
    tm = _row_tile(M)
    y2 = pl.pallas_call(
        functools.partial(_dual_mm_bias_act_kernel, act=act),
        grid=(pl.cdiv(M, tm),),
        in_specs=[
            pl.BlockSpec((tm, ca), lambda i: (i, 0)),
            pl.BlockSpec((tm, cb), lambda i: (i, 0)),
            pl.BlockSpec((ca, cout), lambda i: (0, 0)),
            pl.BlockSpec((cb, cout), lambda i: (0, 0)),
            pl.BlockSpec((1, cout), lambda i: (0, 0)),
        ],
        out_specs=pl.BlockSpec((tm, cout), lambda i: (i, 0)),
        out_shape=jax.ShapeDtypeStruct((M, cout), jnp.float32),
        compiler_params=pltpu.CompilerParams(dimension_semantics=("parallel",)),
    )(a2, b2, wa, wb, bias.reshape(1, cout))
    return y2.reshape(n, h, wd_, cout)


# ----------------------------------------------------------------------------
# Kernel C: fully fused CSPBottleneck block (stride == 1)
#   relu(bn1(conv1 1x1)) -> relu(bn2(conv2 3x3)) -> bn3(conv3 1x1) + identity
#   -> relu ; the 3x3 conv is done as 9 shifted matmuls over a zero-padded
#   VMEM scratch (no im2col, no intermediate HBM traffic).
# ----------------------------------------------------------------------------
def _csp_block_kernel(*refs, H, W, P, d, has_down):
    if has_down:
        (x_ref, w1_ref, b1_ref, w2_ref, b2_ref, w3_ref, b3_ref,
         wd_ref, bd_ref, o_ref, pad_ref) = refs
    else:
        (x_ref, w1_ref, b1_ref, w2_ref, b2_ref, w3_ref, b3_ref,
         o_ref, pad_ref) = refs

    x2d = x_ref[...]                                          # (H*W, Cin)

    # conv1 (1x1) + folded BN + ReLU
    t1 = jnp.dot(x2d, w1_ref[...], preferred_element_type=jnp.float32) + b1_ref[...]
    t1 = jnp.maximum(t1, 0.0)

    # zero-padded activation held in VMEM scratch (never touches HBM)
    pad_ref[...] = jnp.zeros_like(pad_ref)
    pad_ref[pl.ds(d, H), pl.ds(d, W), :] = t1.reshape(H, W, P)
    xpad = pad_ref[...]

    # conv2 (3x3, dilation d, stride 1) as 9 shifted matmuls, f32 accumulate
    acc = jnp.zeros((H * W, P), jnp.float32)
    for ky in range(3):
        for kx in range(3):
            xs = xpad[ky * d:ky * d + H, kx * d:kx * d + W, :].reshape(H * W, P)
            acc = acc + jnp.dot(xs, w2_ref[ky * 3 + kx],
                                preferred_element_type=jnp.float32)
    t2 = jnp.maximum(acc + b2_ref[...], 0.0)

    # conv3 (1x1) + folded BN (no act), residual add, then ReLU
    t3 = jnp.dot(t2, w3_ref[...], preferred_element_type=jnp.float32) + b3_ref[...]
    if has_down:
        ident = jnp.dot(x2d, wd_ref[...], preferred_element_type=jnp.float32) + bd_ref[...]
    else:
        ident = x2d
    o_ref[...] = jnp.maximum(t3 + ident, 0.0).astype(o_ref.dtype)


def _csp_block_fused_pallas(x, p):
    n, h, w_, cin = x.shape
    planes = p["conv1_w"].shape[1]
    cout = p["conv3_w"].shape[1]              # planes * expansion
    d = p["dilation"]
    hp, wp = h + 2 * d, w_ + 2 * d
    hw = h * w_

    s1, b1 = _fold_bn(p["bn1"])
    s2, b2 = _fold_bn(p["bn2"])
    s3, b3 = _fold_bn(p["bn3"])
    w1 = (p["conv1_w"] * s1[None, :]).astype(jnp.float32)
    w2 = (p["conv2_w"] * s2[None, None, None, :]).reshape(9, planes, planes)
    w2 = w2.astype(jnp.float32)
    w3 = (p["conv3_w"] * s3[None, :]).astype(jnp.float32)

    has_down = "down_w" in p
    x2d = x.reshape(n * hw, cin)

    args = [x2d, w1, b1.reshape(1, planes), w2, b2.reshape(1, planes),
            w3, b3.reshape(1, cout)]
    in_specs = [
        pl.BlockSpec((hw, cin), lambda i: (i, 0)),
        pl.BlockSpec((cin, planes), lambda i: (0, 0)),
        pl.BlockSpec((1, planes), lambda i: (0, 0)),
        pl.BlockSpec((9, planes, planes), lambda i: (0, 0, 0)),
        pl.BlockSpec((1, planes), lambda i: (0, 0)),
        pl.BlockSpec((planes, cout), lambda i: (0, 0)),
        pl.BlockSpec((1, cout), lambda i: (0, 0)),
    ]
    if has_down:
        sd, bd = _fold_bn(p["down_bn"])
        wd = (p["down_w"] * sd[None, :]).astype(jnp.float32)
        args += [wd, bd.reshape(1, cout)]
        in_specs += [pl.BlockSpec((cin, cout), lambda i: (0, 0)),
                     pl.BlockSpec((1, cout), lambda i: (0, 0))]

    y2d = pl.pallas_call(
        functools.partial(_csp_block_kernel, H=h, W=w_, P=planes, d=d,
                          has_down=has_down),
        grid=(n,),
        in_specs=in_specs,
        out_specs=pl.BlockSpec((hw, cout), lambda i: (i, 0)),
        out_shape=jax.ShapeDtypeStruct((n * hw, cout), jnp.float32),
        scratch_shapes=[pltpu.VMEM((hp, wp, planes), jnp.float32)],
        compiler_params=pltpu.CompilerParams(dimension_semantics=("parallel",)),
    )(*args)
    return y2d.reshape(n, h, w_, cout)


# ----------------------------------------------------------------------------
# Conv wrappers (NHWC).
# ----------------------------------------------------------------------------
def conv1x1_bn_act(x, w, bn, *, stride=1, act="none", residual=None, use_pallas=True):
    # x: (N,H,W,Cin) ; w: (Cin,Cout) ; residual (optional): (N,Ho,Wo,Cout)
    if stride > 1:
        x = x[:, ::stride, ::stride, :]
    n, h, wd_, c = x.shape
    cout = w.shape[1]
    scale, bias = _fold_bn(bn)
    wf = (w * scale[None, :]).astype(jnp.float32)
    x2d = x.reshape(-1, c)
    res2d = residual.reshape(-1, cout) if residual is not None else None
    if use_pallas:
        y2 = _mm_bias_act_pallas(x2d, wf, bias, res2d, act)
    else:
        y2 = _mm_bias_act_ref(x2d, wf, bias, res2d, act)
    return y2.reshape(n, h, wd_, cout)


def conv3x3_bn_act(x, w, bn, *, stride=1, dilation=1, act="relu", use_pallas=True):
    # Fallback path (reference / stride>1): im2col in JAX glue + fused matmul.
    # TODO(synk): stride>1 3x3 conv keeps the im2col materialization; the
    # halo'd in-kernel 3x3 is only implemented for the fused stride==1 block.
    n, h, wd_, c = x.shape
    d = dilation
    cout = w.shape[-1]
    scale, bias = _fold_bn(bn)
    wf = (w * scale[None, None, None, :]).reshape(9 * c, cout).astype(jnp.float32)
    xp = jnp.pad(x, ((0, 0), (d, d), (d, d), (0, 0)))
    ho = (h - 1) // stride + 1
    wo = (wd_ - 1) // stride + 1
    taps = []
    for ky in range(3):
        for kx in range(3):
            taps.append(
                xp[:, ky * d:ky * d + stride * (ho - 1) + 1:stride,
                      kx * d:kx * d + stride * (wo - 1) + 1:stride, :]
            )
    x2d = jnp.stack(taps, axis=-2).reshape(-1, 9 * c)
    if use_pallas:
        y2 = _mm_bias_act_pallas(x2d, wf, bias, None, act)
    else:
        y2 = _mm_bias_act_ref(x2d, wf, bias, None, act)
    return y2.reshape(n, ho, wo, cout)


# ----------------------------------------------------------------------------
# Model forward (CSPBottleneck / ResLayer / CSPBigBottleneck)
# ----------------------------------------------------------------------------
def csp_bottleneck_forward(x, p, use_pallas=True):
    n, h, w_, _ = x.shape
    if use_pallas and p["stride"] == 1 and (h * w_) % 8 == 0:
        return _csp_block_fused_pallas(x, p)
    # non-fused path (reference, or stride>1)
    identity = x
    out = conv1x1_bn_act(x, p["conv1_w"], p["bn1"], act="relu", use_pallas=use_pallas)
    out = conv3x3_bn_act(out, p["conv2_w"], p["bn2"], stride=p["stride"],
                         dilation=p["dilation"], act="relu", use_pallas=use_pallas)
    if "down_w" in p:
        identity = conv1x1_bn_act(x, p["down_w"], p["down_bn"], stride=p["stride"],
                                  act="none", use_pallas=use_pallas)
    out = conv1x1_bn_act(out, p["conv3_w"], p["bn3"], act="relu",
                         residual=identity, use_pallas=use_pallas)
    return out


def csp_big_forward(x, P, use_pallas=True):
    # downsample=None case of CSPBigBottleneck.forward
    out = x
    identity = out
    out = conv1x1_bn_act(out, P["conv1_w"], P["bn1"], act="leaky", use_pallas=use_pallas)
    for blk in P["blocks"]:
        out = csp_bottleneck_forward(out, blk, use_pallas=use_pallas)
    out = conv1x1_bn_act(out, P["conv2_w"], P["bn2"], stride=P["stride"],
                         act="leaky", use_pallas=use_pallas)
    identity = conv1x1_bn_act(identity, P["conv3_w"], P["bn3"], stride=P["stride"],
                              act="leaky", use_pallas=use_pallas)
    if use_pallas:
        # fused concat + conv4 + BN + leaky (concat never written to HBM)
        out = conv4_dual(out, identity, P["conv4_w"], P["bn4"],
                         stride=P["stride"], act="leaky", use_pallas=True)
    else:
        cat = jnp.concatenate([out, identity], axis=-1)
        out = conv1x1_bn_act(cat, P["conv4_w"], P["bn4"], stride=P["stride"],
                             act="leaky", use_pallas=False)
    return out


# ----------------------------------------------------------------------------
# Deterministic parameter init
# ----------------------------------------------------------------------------
def init_bn(key, c):
    k1, k2, k3, k4 = jax.random.split(key, 4)
    return dict(
        gamma=jax.random.uniform(k1, (c,), jnp.float32, 0.5, 1.5),
        beta=jax.random.normal(k2, (c,), jnp.float32) * 0.1,
        mean=jax.random.normal(k3, (c,), jnp.float32) * 0.1,
        var=jax.random.uniform(k4, (c,), jnp.float32, 0.5, 1.5),
    )


def init_conv(key, cin, cout, k=1):
    fan_in = cin * k * k
    w = jax.random.normal(key, (k, k, cin, cout), jnp.float32) / jnp.sqrt(float(fan_in))
    if k == 1:
        return w.reshape(cin, cout)
    return w


def init_res_layer(key, inplanes, planes, num_blocks, stride, dilation):
    expansion = 2
    blocks = []
    for b in range(num_blocks):
        key, *ks = jax.random.split(key, 9)
        s = stride if b == 0 else 1
        blk = dict(
            stride=s,
            dilation=dilation,
            conv1_w=init_conv(ks[0], inplanes, planes),
            bn1=init_bn(ks[1], planes),
            conv2_w=init_conv(ks[2], planes, planes, 3),
            bn2=init_bn(ks[3], planes),
            conv3_w=init_conv(ks[4], planes, planes * expansion),
            bn3=init_bn(ks[5], planes * expansion),
        )
        if b == 0 and (stride != 1 or inplanes != planes * expansion):
            blk["down_w"] = init_conv(ks[6], inplanes, planes * expansion)
            blk["down_bn"] = init_bn(ks[7], planes * expansion)
        blocks.append(blk)
        inplanes = planes * expansion
    return blocks


def init_csp_big(key, inplanes, planes, num_blocks, stride, dilation):
    keys = jax.random.split(key, 9)
    return dict(
        stride=stride,
        conv1_w=init_conv(keys[0], planes, inplanes),          # planes -> inplanes
        bn1=init_bn(keys[1], inplanes),
        conv2_w=init_conv(keys[2], planes * 2, planes * 2),    # planes*2 -> planes*2
        bn2=init_bn(keys[3], planes * 2),
        conv3_w=init_conv(keys[4], planes, planes * 2),        # planes -> planes*2
        bn3=init_bn(keys[5], planes * 2),
        conv4_w=init_conv(keys[6], planes * 4, planes * 2),    # planes*4 -> planes*2
        bn4=init_bn(keys[7], planes * 2),
        blocks=init_res_layer(keys[8], inplanes, planes, num_blocks, stride, dilation),
    )


# ----------------------------------------------------------------------------
if __name__ == "__main__":
    inplanes, planes, num_blocks = 16, 4, 2
    stride, dilation = 1, 1

    key = jax.random.PRNGKey(0)
    kx, kp = jax.random.split(key)
    # PyTorch-style NCHW input; channels = planes (as implied by conv1: planes->inplanes)
    x_nchw = jax.random.normal(kx, (2, planes, 16, 16), jnp.float32)
    params = init_csp_big(kp, inplanes, planes, num_blocks, stride, dilation)

    x_nhwc = jnp.transpose(x_nchw, (0, 2, 3, 1))

    out = csp_big_forward(x_nhwc, params, use_pallas=True)
    out_nchw = jnp.transpose(out, (0, 3, 1, 2))
    jax.block_until_ready(out_nchw)

    # pure-JAX reference for correctness check
    ref = csp_big_forward(x_nhwc, params, use_pallas=False)
    ref_nchw = jnp.transpose(ref, (0, 3, 1, 2))

    assert out_nchw.shape == (2, planes * 2, 16, 16), out_nchw.shape
    err = float(jnp.max(jnp.abs(out_nchw - ref_nchw)))
    assert err < 1e-4, f"max abs error {err}"

    print("KERNEL_OK")
</pallas_src>

<mosaic_0001>
module attributes {stable_mosaic.version = 11 : i64} {
  func.func @_mm_bias_act_kernel(%arg0: i32, %arg1: memref<512x4xf32, #tpu.memory_space<vmem>>, %arg2: memref<4x16xf32, #tpu.memory_space<vmem>>, %arg3: memref<1x16xf32, #tpu.memory_space<vmem>>, %arg4: memref<512x16xf32, #tpu.memory_space<vmem>>) attributes {dimension_semantics = [#tpu.dimension_semantics<parallel>], iteration_bounds = array<i64: 1>, scalar_prefetch = 0 : i64, scratch_operands = 0 : i64, tpu.core_type = #tpu.core_type<tc>, window_params = [{transform_indices = @transform_0, window_bounds = array<i64: 512, 4>}, {pipeline_mode = #tpu.pipeline_mode<synchronous>, transform_indices = @transform_1, window_bounds = array<i64: 4, 16>}, {pipeline_mode = #tpu.pipeline_mode<synchronous>, transform_indices = @transform_2, window_bounds = array<i64: 1, 16>}, {transform_indices = @transform_3, window_bounds = array<i64: 512, 16>}]} {
    %c0 = arith.constant 0 : index
    %c0_0 = arith.constant 0 : index
    %0 = vector.load %arg1[%c0, %c0_0] : memref<512x4xf32, #tpu.memory_space<vmem>>, vector<512x4xf32>
    %c0_1 = arith.constant 0 : index
    %c0_2 = arith.constant 0 : index
    %1 = vector.load %arg2[%c0_1, %c0_2] : memref<4x16xf32, #tpu.memory_space<vmem>>, vector<4x16xf32>
    %cst = arith.constant dense<0.000000e+00> : vector<512x16xf32>
    %2 = tpu.matmul %0, %1, %cst {dimension_numbers = #tpu.dot_dimension_numbers<[1], [0], [0], [1], [0, 0, 1, 1], [], []>} : vector<512x4xf32>, vector<4x16xf32>, vector<512x16xf32> -> vector<512x16xf32>
    %c0_3 = arith.constant 0 : index
    %c0_4 = arith.constant 0 : index
    %3 = vector.load %arg3[%c0_3, %c0_4] : memref<1x16xf32, #tpu.memory_space<vmem>>, vector<1x16xf32>
    %4 = vector.broadcast %3 : vector<1x16xf32> to vector<512x16xf32>
    %5 = arith.addf %2, %4 : vector<512x16xf32>
    %cst_5 = arith.constant 1.000000e-01 : f32
    %6 = vector.broadcast %cst_5 : f32 to vector<512x16xf32>
    %7 = arith.mulf %6, %5 : vector<512x16xf32>
    %8 = arith.maximumf %5, %7 : vector<512x16xf32>
    %c0_6 = arith.constant 0 : index
    %c0_7 = arith.constant 0 : index
    %9 = vector.load %arg4[%c0_6, %c0_7] : memref<512x16xf32, #tpu.memory_space<vmem>>, vector<512x16xf32>
    tpu.vector_store %arg4[%c0_6, %c0_7], %8 {strides = array<i32>} : memref<512x16xf32, #tpu.memory_space<vmem>>, vector<512x16xf32>,
    return
  }
  func.func @transform_0(%arg0: i32) -> (i32, i32) {
    %c0_i32 = arith.constant 0 : i32
    %c0_i32_0 = arith.constant 0 : i32
    return %arg0, %c0_i32 : i32, i32
  }
  func.func @transform_1(%arg0: i32) -> (i32, i32) {
    %c0_i32 = arith.constant 0 : i32
    %c0_i32_0 = arith.constant 0 : i32
    %c0_i32_1 = arith.constant 0 : i32
    return %c0_i32, %c0_i32_0 : i32, i32
  }
  func.func @transform_2(%arg0: i32) -> (i32, i32) {
    %c0_i32 = arith.constant 0 : i32
    %c0_i32_0 = arith.constant 0 : i32
    %c0_i32_1 = arith.constant 0 : i32
    return %c0_i32, %c0_i32_0 : i32, i32
  }
  func.func @transform_3(%arg0: i32) -> (i32, i32) {
    %c0_i32 = arith.constant 0 : i32
    %c0_i32_0 = arith.constant 0 : i32
    return %arg0, %c0_i32 : i32, i32
  }
}

</mosaic_0001>

<bundles_post_ra>
// kernel: tpu_custom_call.1
= control target key start
LH: loop header
LB: loop body
LE: loop exit
PB: predicated region body
PF: predicated region fallthrough
CT: control target
= control target key end

     0   :  { %vm279_vm0 = vcmask 1043456   ;;  %vm86_vm1 = vcmask 31744   ;;  %vm796_vm2 = vcmask 130048   ;;  %s1700_s1 = inlined_call_operand.vmem [shape: f32[4,16], index: 1, kind: input, shape index: {}]   ;;  %s1701_s0 = inlined_call_operand.vmem [shape: f32[512,4], index: 0, kind: input, shape index: {}]   ;;  %s1702_s2 = inlined_call_operand.vmem [shape: f32[1,16], index: 2, kind: input, shape index: {}]   ;;  %s1703_s3 = inlined_call_operand.vmem [shape: f32[512,16], index: 3, kind: output, shape index: {}]  }
   0x1   :  { %v78_v0 = vld [vmem:[%s1700_s1] sm:$0xf]  ;;  %v15_v3 = vld [vmem:[%s1701_s0 + $0x8] sm:$0xff]  ;;  %v16_v5 = vld [vmem:[%s1701_s0 + $0x10] sm:$0xff] }
   0x2   :  { %v14_v1 = vld [vmem:[%s1701_s0] sm:$0xff]  ;;  %996 = vmatprep.subr.msk.mxu0 %vm279_vm0, %v78_v0  ;;  %1094 = vmatprep.subr.msk.mxu1 %vm279_vm0, %v78_v0  ;;  %v47_v4 = vld [vmem:[%s1701_s0 + $0x108] sm:$0xff]  ;;  %v48_v6 = vld [vmem:[%s1701_s0 + $0x110] sm:$0xff] }
   0x3   :  { %v46_v2 = vld [vmem:[%s1701_s0 + $0x100] sm:$0xff]  ;;  %997 = vmatpush3.msk.msra.mxu0 %vm279_vm0, %v78_v0  ;;  %1095 = vmatpush3.msk.msra.mxu1 %vm279_vm0, %v78_v0  ;;  %v17_v7 = vld [vmem:[%s1701_s0 + $0x18] sm:$0xff]  ;;  %v19_v11 = vld [vmem:[%s1701_s0 + $0x28] sm:$0xff] }
   0x4   :  { %998 = vmatprep.mubr.msk.f32.mxu0 %vm86_vm1, %v14_v1  ;;  %1046 = vmatprep.mubr.msk.f32.mxu1 %vm86_vm1, %v46_v2  ;;  %v49_v8 = vld [vmem:[%s1701_s0 + $0x118] sm:$0xff]  ;;  %v18_v9 = vld [vmem:[%s1701_s0 + $0x20] sm:$0xff]  ;;  %v51_v12 = vld [vmem:[%s1701_s0 + $0x128] sm:$0xff] }
   0x5   :  { %999 = vmatmul.mubr.msk.f32.vlgmr.msra.gmra.mxu0 %vm86_vm1, %v15_v3  ;;  %1047 = vmatmul.mubr.msk.f32.vlgmr.msra.gmra.mxu1 %vm86_vm1, %v47_v4  ;;  %v50_v10 = vld [vmem:[%s1701_s0 + $0x120] sm:$0xff]  ;;  %v20_v13 = vld [vmem:[%s1701_s0 + $0x30] sm:$0xff]  ;;  %v21_v15 = vld [vmem:[%s1701_s0 + $0x38] sm:$0xff] }
   0x6   :  { %1001 = vmatprep.mubr.msk.f32.mxu0 %vm86_vm1, %v16_v5  ;;  %1049 = vmatprep.mubr.msk.f32.mxu1 %vm86_vm1, %v48_v6  ;;  %v52_v14 = vld [vmem:[%s1701_s0 + $0x130] sm:$0xff]  ;;  %v53_v16 = vld [vmem:[%s1701_s0 + $0x138] sm:$0xff]  ;;  %v22_v17 = vld [vmem:[%s1701_s0 + $0x40] sm:$0xff] }
   0x7   :  { %v54_v18 = vld [vmem:[%s1701_s0 + $0x140] sm:$0xff]  ;;  %v23_v19 = vld [vmem:[%s1701_s0 + $0x48] sm:$0xff]  ;;  %v24_v21 = vld [vmem:[%s1701_s0 + $0x50] sm:$0xff] }
   0x8   :  { %v55_v20 = vld [vmem:[%s1701_s0 + $0x148] sm:$0xff]  ;;  %v56_v22 = vld [vmem:[%s1701_s0 + $0x150] sm:$0xff]  ;;  %v25_v23 = vld [vmem:[%s1701_s0 + $0x58] sm:$0xff] }
   0x9   :  { %1002 = vmatmul.mubr.msk.f32.gmra.mxu0 %vm86_vm1, %v17_v7  ;;  %1050 = vmatmul.mubr.msk.f32.gmra.mxu1 %vm86_vm1, %v49_v8  ;;  %v57_v24 = vld [vmem:[%s1701_s0 + $0x158] sm:$0xff]  ;;  %v26_v25 = vld [vmem:[%s1701_s0 + $0x60] sm:$0xff]  ;;  %v27_v27 = vld [vmem:[%s1701_s0 + $0x68] sm:$0xff] }
   0xa   :  { %1004 = vmatprep.mubr.msk.f32.mxu0 %vm86_vm1, %v18_v9  ;;  %1052 = vmatprep.mubr.msk.f32.mxu1 %vm86_vm1, %v50_v10  ;;  %v58_v26 = vld [vmem:[%s1701_s0 + $0x160] sm:$0xff]  ;;  %v59_v28 = vld [vmem:[%s1701_s0 + $0x168] sm:$0xff]  ;;  %v28_v29 = vld [vmem:[%s1701_s0 + $0x70] sm:$0xff] }
   0xb   :  { %v60_v30 = vld [vmem:[%s1701_s0 + $0x170] sm:$0xff]  ;;  %v29_v31 = vld [vmem:[%s1701_s0 + $0x78] sm:$0xff]  ;;  %v30_v33 = vld [vmem:[%s1701_s0 + $0x80] sm:$0xff] }
   0xc   :  { %v61_v32 = vld [vmem:[%s1701_s0 + $0x178] sm:$0xff]  ;;  %v62_v34 = vld [vmem:[%s1701_s0 + $0x180] sm:$0xff]  ;;  %v31_v35 = vld [vmem:[%s1701_s0 + $0x88] sm:$0xff] }
   0xd   :  { %1005 = vmatmul.mubr.msk.f32.gmra.mxu0 %vm86_vm1, %v19_v11  ;;  %1053 = vmatmul.mubr.msk.f32.gmra.mxu1 %vm86_vm1, %v51_v12  ;;  %v63_v36 = vld [vmem:[%s1701_s0 + $0x188] sm:$0xff]  ;;  %v32_v37 = vld [vmem:[%s1701_s0 + $0x90] sm:$0xff]  ;;  %v33_v39 = vld [vmem:[%s1701_s0 + $0x98] sm:$0xff] }
   0xe   :  { %1007 = vmatprep.mubr.msk.f32.mxu0 %vm86_vm1, %v20_v13  ;;  %1055 = vmatprep.mubr.msk.f32.mxu1 %vm86_vm1, %v52_v14  ;;  %v64_v38 = vld [vmem:[%s1701_s0 + $0x190] sm:$0xff]  ;;  %v65_v40 = vld [vmem:[%s1701_s0 + $0x198] sm:$0xff]  ;;  %v34_v41 = vld [vmem:[%s1701_s0 + $0xa0] sm:$0xff] }
   0xf   :  { %v66_v42 = vld [vmem:[%s1701_s0 + $0x1a0] sm:$0xff]  ;;  %v35_v43 = vld [vmem:[%s1701_s0 + $0xa8] sm:$0xff]  ;;  %v36_v45 = vld [vmem:[%s1701_s0 + $0xb0] sm:$0xff] }
  0x10   :  { %v67_v44 = vld [vmem:[%s1701_s0 + $0x1a8] sm:$0xff]  ;;  %v68_v46 = vld [vmem:[%s1701_s0 + $0x1b0] sm:$0xff]  ;;  %v37_v47 = vld [vmem:[%s1701_s0 + $0xb8] sm:$0xff] }
  0x11   :  { %1008 = vmatmul.mubr.msk.f32.gmra.mxu0 %vm86_vm1, %v21_v15  ;;  %1056 = vmatmul.mubr.msk.f32.gmra.mxu1 %vm86_vm1, %v53_v16  ;;  %v69_v48 = vld [vmem:[%s1701_s0 + $0x1b8] sm:$0xff]  ;;  %v38_v49 = vld [vmem:[%s1701_s0 + $0xc0] sm:$0xff]  ;;  %v39_v51 = vld [vmem:[%s1701_s0 + $0xc8] sm:$0xff] }
  0x12   :  { %1010 = vmatprep.mubr.msk.f32.mxu0 %vm86_vm1, %v22_v17  ;;  %1058 = vmatprep.mubr.msk.f32.mxu1 %vm86_vm1, %v54_v18  ;;  %v70_v50 = vld [vmem:[%s1701_s0 + $0x1c0] sm:$0xff]  ;;  %v71_v52 = vld [vmem:[%s1701_s0 + $0x1c8] sm:$0xff]  ;;  %v40_v53 = vld [vmem:[%s1701_s0 + $0xd0] sm:$0xff] }
  0x13   :  { %v72_v54 = vld [vmem:[%s1701_s0 + $0x1d0] sm:$0xff]  ;;  %v41_v55 = vld [vmem:[%s1701_s0 + $0xd8] sm:$0xff]  ;;  %v42_v57 = vld [vmem:[%s1701_s0 + $0xe0] sm:$0xff] }
  0x14   :  { %v73_v56 = vld [vmem:[%s1701_s0 + $0x1d8] sm:$0xff]  ;;  %v74_v58 = vld [vmem:[%s1701_s0 + $0x1e0] sm:$0xff]  ;;  %v43_v59 = vld [vmem:[%s1701_s0 + $0xe8] sm:$0xff] }
  0x15   :  { %1011 = vmatmul.mubr.msk.f32.gmra.mxu0 %vm86_vm1, %v23_v19  ;;  %1059 = vmatmul.mubr.msk.f32.gmra.mxu1 %vm86_vm1, %v55_v20  ;;  %v75_v60 = vld [vmem:[%s1701_s0 + $0x1e8] sm:$0xff]  ;;  %v44_v61 = vld [vmem:[%s1701_s0 + $0xf0] sm:$0xff]  ;;  %v45_v63 = vld [vmem:[%s1701_s0 + $0xf8] sm:$0xff] }
  0x16   :  { %1013 = vmatprep.mubr.msk.f32.mxu0 %vm86_vm1, %v24_v21  ;;  %1061 = vmatprep.mubr.msk.f32.mxu1 %vm86_vm1, %v56_v22  ;;  %v76_v62 = vld [vmem:[%s1701_s0 + $0x1f0] sm:$0xff]  ;;  %v77_v0 = vld [vmem:[%s1701_s0 + $0x1f8] sm:$0xff]  ;;  %v1378_v1 = vld [vmem:[%s1702_s2] ss:$0 sm:$0xff] }
  0x19   :  { %1014 = vmatmul.mubr.msk.f32.gmra.mxu0 %vm86_vm1, %v25_v23  ;;  %1062 = vmatmul.mubr.msk.f32.gmra.mxu1 %vm86_vm1, %v57_v24 }
  0x1a   :  { %1016 = vmatprep.mubr.msk.f32.mxu0 %vm86_vm1, %v26_v25  ;;  %1064 = vmatprep.mubr.msk.f32.mxu1 %vm86_vm1, %v58_v26 }
  0x1d   :  { %1017 = vmatmul.mubr.msk.f32.gmra.mxu0 %vm86_vm1, %v27_v27  ;;  %1065 = vmatmul.mubr.msk.f32.gmra.mxu1 %vm86_vm1, %v59_v28 }
  0x1e   :  { %1019 = vmatprep.mubr.msk.f32.mxu0 %vm86_vm1, %v28_v29  ;;  %1067 = vmatprep.mubr.msk.f32.mxu1 %vm86_vm1, %v60_v30 }
  0x21   :  { %1020 = vmatmul.mubr.msk.f32.gmra.mxu0 %vm86_vm1, %v29_v31  ;;  %1068 = vmatmul.mubr.msk.f32.gmra.mxu1 %vm86_vm1, %v61_v32 }
  0x22   :  { %1022 = vmatprep.mubr.msk.f32.mxu0 %vm86_vm1, %v30_v33  ;;  %1070 = vmatprep.mubr.msk.f32.mxu1 %vm86_vm1, %v62_v34 }
  0x25   :  { %1023 = vmatmul.mubr.msk.f32.gmra.mxu0 %vm86_vm1, %v31_v35  ;;  %1071 = vmatmul.mubr.msk.f32.gmra.mxu1 %vm86_vm1, %v63_v36 }
  0x26   :  { %1025 = vmatprep.mubr.msk.f32.mxu0 %vm86_vm1, %v32_v37  ;;  %1073 = vmatprep.mubr.msk.f32.mxu1 %vm86_vm1, %v64_v38 }
  0x29   :  { %1026 = vmatmul.mubr.msk.f32.gmra.mxu0 %vm86_vm1, %v33_v39  ;;  %1074 = vmatmul.mubr.msk.f32.gmra.mxu1 %vm86_vm1, %v65_v40 }
  0x2a   :  { %1028 = vmatprep.mubr.msk.f32.mxu0 %vm86_vm1, %v34_v41  ;;  %1076 = vmatprep.mubr.msk.f32.mxu1 %vm86_vm1, %v66_v42 }
  0x2d   :  { %1029 = vmatmul.mubr.msk.f32.gmra.mxu0 %vm86_vm1, %v35_v43  ;;  %1077 = vmatmul.mubr.msk.f32.gmra.mxu1 %vm86_vm1, %v67_v44 }
  0x2e   :  { %1031 = vmatprep.mubr.msk.f32.mxu0 %vm86_vm1, %v36_v45  ;;  %1079 = vmatprep.mubr.msk.f32.mxu1 %vm86_vm1, %v68_v46 }
  0x31   :  { %1032 = vmatmul.mubr.msk.f32.gmra.mxu0 %vm86_vm1, %v37_v47  ;;  %1080 = vmatmul.mubr.msk.f32.gmra.mxu1 %vm86_vm1, %v69_v48 }
  0x32   :  { %1034 = vmatprep.mubr.msk.f32.mxu0 %vm86_vm1, %v38_v49  ;;  %1082 = vmatprep.mubr.msk.f32.mxu1 %vm86_vm1, %v70_v50 }
  0x35   :  { %1035 = vmatmul.mubr.msk.f32.gmra.mxu0 %vm86_vm1, %v39_v51  ;;  %1083 = vmatmul.mubr.msk.f32.gmra.mxu1 %vm86_vm1, %v71_v52 }
  0x36   :  { %1037 = vmatprep.mubr.msk.f32.mxu0 %vm86_vm1, %v40_v53  ;;  %1085 = vmatprep.mubr.msk.f32.mxu1 %vm86_vm1, %v72_v54 }
  0x39   :  { %1038 = vmatmul.mubr.msk.f32.gmra.mxu0 %vm86_vm1, %v41_v55  ;;  %1086 = vmatmul.mubr.msk.f32.gmra.mxu1 %vm86_vm1, %v73_v56 }
  0x3a   :  { %1040 = vmatprep.mubr.msk.f32.mxu0 %vm86_vm1, %v42_v57  ;;  %1088 = vmatprep.mubr.msk.f32.mxu1 %vm86_vm1, %v74_v58 }
  0x3d   :  { %1041 = vmatmul.mubr.msk.f32.gmra.mxu0 %vm86_vm1, %v43_v59  ;;  %1089 = vmatmul.mubr.msk.f32.gmra.mxu1 %vm86_vm1, %v75_v60 }
  0x3e   :  { %1043 = vmatprep.mubr.msk.f32.mxu0 %vm86_vm1, %v44_v61  ;;  %1091 = vmatprep.mubr.msk.f32.mxu1 %vm86_vm1, %v76_v62 }
  0x41   :  { %1044 = vmatmul.mubr.msk.f32.gmra.mxu0 %vm86_vm1, %v45_v63  ;;  %1092 = vmatmul.mubr.msk.f32.gmra.mxu1 %vm86_vm1, %v77_v0 }
  0xc5   :  { %v1000_v2 = vpop.f32.mrf.mxu0  ;;  %v1048_v3 = vpop.f32.mrf.mxu1 }
  0xc6   :  { %v355_v4 = vadd.f32 %v1000_v2, %v1378_v1  ;;  %v515_v5 = vadd.f32 %v1048_v3, %v1378_v1 }
  0xc7   :  { %v349_v6 = vpop.f32.mrf.mxu0  ;;  %v509_v7 = vpop.f32.mrf.mxu1 }
  0xc8   :  { %v669_v8 = vmul.f32 0.1, %v355_v4  ;;  %v701_v9 = vmul.f32 0.1, %v515_v5  ;;  %v350_v10 = vadd.f32 %v1378_v1, %v349_v6  ;;  %v510_v11 = vadd.f32 %v1378_v1, %v509_v7 }
  0xc9   :  { %v1003_v12 = vpop.f32.mrf.mxu0  ;;  %v1051_v13 = vpop.f32.mrf.mxu1 }
  0xca   :  { %v733_v14 = vmax.f32 %v355_v4, %v669_v8  ;;  %v765_v15 = vmax.f32 %v515_v5, %v701_v9  ;;  %v668_v16 = vmul.f32 0.1, %v350_v10  ;;  %v700_v17 = vmul.f32 0.1, %v510_v11 }
  0xcb   :  { %v365_v18 = vadd.f32 %v1003_v12, %v1378_v1  ;;  %v525_v19 = vadd.f32 %v1051_v13, %v1378_v1  ;;  %v359_v20 = vpop.f32.mrf.mxu0  ;;  %v519_v21 = vpop.f32.mrf.mxu1 }
  0xcc   :  { %798 = vst.msk [vmem:[%s1703_s3 + $0x8] sm:$0xff] %vm796_vm2, %v733_v14  ;;  %830 = vst.msk [vmem:[%s1703_s3 + $0x108] sm:$0xff] %vm796_vm2, %v765_v15  ;;  %v732_v22 = vmax.f32 %v350_v10, %v668_v16  ;;  %v764_v23 = vmax.f32 %v510_v11, %v700_v17  ;;  %v360_v24 = vadd.f32 %v1378_v1, %v359_v20 }
  0xcd   :  { %v520_v25 = vadd.f32 %v1378_v1, %v519_v21  ;;  %v671_v26 = vmul.f32 0.1, %v365_v18  ;;  %v703_v27 = vmul.f32 0.1, %v525_v19  ;;  %v1006_v28 = vpop.f32.mrf.mxu0  ;;  %v1054_v29 = vpop.f32.mrf.mxu1 }
  0xce   :  { %797 = vst.msk [vmem:[%s1703_s3] sm:$0xff] %vm796_vm2, %v732_v22  ;;  %829 = vst.msk [vmem:[%s1703_s3 + $0x100] sm:$0xff] %vm796_vm2, %v764_v23  ;;  %v670_v30 = vmul.f32 0.1, %v360_v24  ;;  %v375_v32 = vadd.f32 %v1006_v28, %v1378_v1  ;;  %v535_v33 = vadd.f32 %v1054_v29, %v1378_v1 }
  0xcf   :  { %v702_v31 = vmul.f32 0.1, %v520_v25  ;;  %v735_v34 = vmax.f32 %v365_v18, %v671_v26  ;;  %v767_v35 = vmax.f32 %v525_v19, %v703_v27  ;;  %v369_v36 = vpop.f32.mrf.mxu0  ;;  %v529_v37 = vpop.f32.mrf.mxu1 }
  0xd0   :  { %v734_v38 = vmax.f32 %v360_v24, %v670_v30  ;;  %v673_v40 = vmul.f32 0.1, %v375_v32  ;;  %v705_v41 = vmul.f32 0.1, %v535_v33  ;;  %v370_v42 = vadd.f32 %v1378_v1, %v369_v36 }
  0xd1   :  { %v766_v39 = vmax.f32 %v520_v25, %v702_v31  ;;  %800 = vst.msk [vmem:[%s1703_s3 + $0x18] sm:$0xff] %vm796_vm2, %v735_v34  ;;  %832 = vst.msk [vmem:[%s1703_s3 + $0x118] sm:$0xff] %vm796_vm2, %v767_v35  ;;  %v530_v43 = vadd.f32 %v1378_v1, %v529_v37  ;;  %v1009_v44 = vpop.f32.mrf.mxu0  ;;  %v1057_v45 = vpop.f32.mrf.mxu1 }
  0xd2   :  { %799 = vst.msk [vmem:[%s1703_s3 + $0x10] sm:$0xff] %vm796_vm2, %v734_v38  ;;  %v737_v46 = vmax.f32 %v375_v32, %v673_v40  ;;  %v769_v47 = vmax.f32 %v535_v33, %v705_v41  ;;  %v385_v48 = vadd.f32 %v1009_v44, %v1378_v1  ;;  %v545_v49 = vadd.f32 %v1057_v45, %v1378_v1 }
  0xd3   :  { %831 = vst.msk [vmem:[%s1703_s3 + $0x110] sm:$0xff] %vm796_vm2, %v766_v39  ;;  %v672_v50 = vmul.f32 0.1, %v370_v42  ;;  %v704_v51 = vmul.f32 0.1, %v530_v43  ;;  %v379_v52 = vpop.f32.mrf.mxu0  ;;  %v539_v53 = vpop.f32.mrf.mxu1 }
  0xd4   :  { %802 = vst.msk [vmem:[%s1703_s3 + $0x28] sm:$0xff] %vm796_vm2, %v737_v46  ;;  %834 = vst.msk [vmem:[%s1703_s3 + $0x128] sm:$0xff] %vm796_vm2, %v769_v47  ;;  %v675_v54 = vmul.f32 0.1, %v385_v48  ;;  %v707_v55 = vmul.f32 0.1, %v545_v49  ;;  %v380_v56 = vadd.f32 %v1378_v1, %v379_v52  ;;  %v540_v57 = vadd.f32 %v1378_v1, %v539_v53 }
  0xd5   :  { %v736_v58 = vmax.f32 %v370_v42, %v672_v50  ;;  %v768_v59 = vmax.f32 %v530_v43, %v704_v51  ;;  %v1012_v60 = vpop.f32.mrf.mxu0  ;;  %v1060_v61 = vpop.f32.mrf.mxu1 }
  0xd6   :  { %v739_v62 = vmax.f32 %v385_v48, %v675_v54  ;;  %v771_v63 = vmax.f32 %v545_v49, %v707_v55  ;;  %v674_v0 = vmul.f32 0.1, %v380_v56  ;;  %v706_v2 = vmul.f32 0.1, %v540_v57 }
  0xd7   :  { %801 = vst.msk [vmem:[%s1703_s3 + $0x20] sm:$0xff] %vm796_vm2, %v736_v58  ;;  %833 = vst.msk [vmem:[%s1703_s3 + $0x120] sm:$0xff] %vm796_vm2, %v768_v59  ;;  %v395_v3 = vadd.f32 %v1012_v60, %v1378_v1  ;;  %v555_v4 = vadd.f32 %v1060_v61, %v1378_v1  ;;  %v389_v5 = vpop.f32.mrf.mxu0  ;;  %v549_v6 = vpop.f32.mrf.mxu1 }
  0xd8   :  { %804 = vst.msk [vmem:[%s1703_s3 + $0x38] sm:$0xff] %vm796_vm2, %v739_v62  ;;  %836 = vst.msk [vmem:[%s1703_s3 + $0x138] sm:$0xff] %vm796_vm2, %v771_v63  ;;  %v738_v7 = vmax.f32 %v380_v56, %v674_v0  ;;  %v770_v8 = vmax.f32 %v540_v57, %v706_v2  ;;  %v390_v9 = vadd.f32 %v1378_v1, %v389_v5 }
  0xd9   :  { %v550_v10 = vadd.f32 %v1378_v1, %v549_v6  ;;  %v677_v11 = vmul.f32 0.1, %v395_v3  ;;  %v709_v12 = vmul.f32 0.1, %v555_v4  ;;  %v1015_v13 = vpop.f32.mrf.mxu0  ;;  %v1063_v14 = vpop.f32.mrf.mxu1 }
  0xda   :  { %803 = vst.msk [vmem:[%s1703_s3 + $0x30] sm:$0xff] %vm796_vm2, %v738_v7  ;;  %835 = vst.msk [vmem:[%s1703_s3 + $0x130] sm:$0xff] %vm796_vm2, %v770_v8  ;;  %v676_v15 = vmul.f32 0.1, %v390_v9  ;;  %v405_v17 = vadd.f32 %v1015_v13, %v1378_v1  ;;  %v565_v18 = vadd.f32 %v1063_v14, %v1378_v1 }
  0xdb   :  { %v708_v16 = vmul.f32 0.1, %v550_v10  ;;  %v741_v19 = vmax.f32 %v395_v3, %v677_v11  ;;  %v773_v20 = vmax.f32 %v555_v4, %v709_v12  ;;  %v399_v21 = vpop.f32.mrf.mxu0  ;;  %v559_v22 = vpop.f32.mrf.mxu1 }
  0xdc   :  { %v740_v23 = vmax.f32 %v390_v9, %v676_v15  ;;  %v679_v25 = vmul.f32 0.1, %v405_v17  ;;  %v711_v26 = vmul.f32 0.1, %v565_v18  ;;  %v400_v27 = vadd.f32 %v1378_v1, %v399_v21 }
  0xdd   :  { %v772_v24 = vmax.f32 %v550_v10, %v708_v16  ;;  %806 = vst.msk [vmem:[%s1703_s3 + $0x48] sm:$0xff] %vm796_vm2, %v741_v19  ;;  %838 = vst.msk [vmem:[%s1703_s3 + $0x148] sm:$0xff] %vm796_vm2, %v773_v20  ;;  %v560_v28 = vadd.f32 %v1378_v1, %v559_v22  ;;  %v1018_v29 = vpop.f32.mrf.mxu0  ;;  %v1066_v30 = vpop.f32.mrf.mxu1 }
  0xde   :  { %805 = vst.msk [vmem:[%s1703_s3 + $0x40] sm:$0xff] %vm796_vm2, %v740_v23  ;;  %v743_v31 = vmax.f32 %v405_v17, %v679_v25  ;;  %v775_v32 = vmax.f32 %v565_v18, %v711_v26  ;;  %v415_v33 = vadd.f32 %v1018_v29, %v1378_v1  ;;  %v575_v34 = vadd.f32 %v1066_v30, %v1378_v1 }
  0xdf   :  { %837 = vst.msk [vmem:[%s1703_s3 + $0x140] sm:$0xff] %vm796_vm2, %v772_v24  ;;  %v678_v35 = vmul.f32 0.1, %v400_v27  ;;  %v710_v36 = vmul.f32 0.1, %v560_v28  ;;  %v409_v37 = vpop.f32.mrf.mxu0  ;;  %v569_v38 = vpop.f32.mrf.mxu1 }
  0xe0   :  { %808 = vst.msk [vmem:[%s1703_s3 + $0x58] sm:$0xff] %vm796_vm2, %v743_v31  ;;  %840 = vst.msk [vmem:[%s1703_s3 + $0x158] sm:$0xff] %vm796_vm2, %v775_v32  ;;  %v681_v39 = vmul.f32 0.1, %v415_v33  ;;  %v713_v40 = vmul.f32 0.1, %v575_v34  ;;  %v410_v41 = vadd.f32 %v1378_v1, %v409_v37  ;;  %v570_v42 = vadd.f32 %v1378_v1, %v569_v38 }
  0xe1   :  { %v742_v43 = vmax.f32 %v400_v27, %v678_v35  ;;  %v774_v44 = vmax.f32 %v560_v28, %v710_v36  ;;  %v1021_v45 = vpop.f32.mrf.mxu0  ;;  %v1069_v46 = vpop.f32.mrf.mxu1 }
  0xe2   :  { %v745_v47 = vmax.f32 %v415_v33, %v681_v39  ;;  %v777_v48 = vmax.f32 %v575_v34, %v713_v40  ;;  %v680_v49 = vmul.f32 0.1, %v410_v41  ;;  %v712_v50 = vmul.f32 0.1, %v570_v42 }
  0xe3   :  { %807 = vst.msk [vmem:[%s1703_s3 + $0x50] sm:$0xff] %vm796_vm2, %v742_v43  ;;  %839 = vst.msk [vmem:[%s1703_s3 + $0x150] sm:$0xff] %vm796_vm2, %v774_v44  ;;  %v425_v51 = vadd.f32 %v1021_v45, %v1378_v1  ;;  %v585_v52 = vadd.f32 %v1069_v46, %v1378_v1  ;;  %v419_v53 = vpop.f32.mrf.mxu0  ;;  %v579_v54 = vpop.f32.mrf.mxu1 }
  0xe4   :  { %810 = vst.msk [vmem:[%s1703_s3 + $0x68] sm:$0xff] %vm796_vm2, %v745_v47  ;;  %842 = vst.msk [vmem:[%s1703_s3 + $0x168] sm:$0xff] %vm796_vm2, %v777_v48  ;;  %v744_v55 = vmax.f32 %v410_v41, %v680_v49  ;;  %v776_v56 = vmax.f32 %v570_v42, %v712_v50  ;;  %v420_v57 = vadd.f32 %v1378_v1, %v419_v53 }
  0xe5   :  { %v580_v58 = vadd.f32 %v1378_v1, %v579_v54  ;;  %v683_v59 = vmul.f32 0.1, %v425_v51  ;;  %v715_v60 = vmul.f32 0.1, %v585_v52  ;;  %v1024_v61 = vpop.f32.mrf.mxu0  ;;  %v1072_v62 = vpop.f32.mrf.mxu1 }
  0xe6   :  { %809 = vst.msk [vmem:[%s1703_s3 + $0x60] sm:$0xff] %vm796_vm2, %v744_v55  ;;  %841 = vst.msk [vmem:[%s1703_s3 + $0x160] sm:$0xff] %vm796_vm2, %v776_v56  ;;  %v682_v63 = vmul.f32 0.1, %v420_v57  ;;  %v435_v2 = vadd.f32 %v1024_v61, %v1378_v1  ;;  %v595_v3 = vadd.f32 %v1072_v62, %v1378_v1 }
  0xe7   :  { %v714_v0 = vmul.f32 0.1, %v580_v58  ;;  %v747_v4 = vmax.f32 %v425_v51, %v683_v59  ;;  %v779_v5 = vmax.f32 %v585_v52, %v715_v60  ;;  %v429_v6 = vpop.f32.mrf.mxu0  ;;  %v589_v7 = vpop.f32.mrf.mxu1 }
  0xe8   :  { %v746_v8 = vmax.f32 %v420_v57, %v682_v63  ;;  %v685_v10 = vmul.f32 0.1, %v435_v2  ;;  %v717_v11 = vmul.f32 0.1, %v595_v3  ;;  %v430_v12 = vadd.f32 %v1378_v1, %v429_v6 }
  0xe9   :  { %v778_v9 = vmax.f32 %v580_v58, %v714_v0  ;;  %812 = vst.msk [vmem:[%s1703_s3 + $0x78] sm:$0xff] %vm796_vm2, %v747_v4  ;;  %844 = vst.msk [vmem:[%s1703_s3 + $0x178] sm:$0xff] %vm796_vm2, %v779_v5  ;;  %v590_v13 = vadd.f32 %v1378_v1, %v589_v7  ;;  %v1027_v14 = vpop.f32.mrf.mxu0  ;;  %v1075_v15 = vpop.f32.mrf.mxu1 }
  0xea   :  { %811 = vst.msk [vmem:[%s1703_s3 + $0x70] sm:$0xff] %vm796_vm2, %v746_v8  ;;  %v749_v16 = vmax.f32 %v435_v2, %v685_v10  ;;  %v781_v17 = vmax.f32 %v595_v3, %v717_v11  ;;  %v445_v18 = vadd.f32 %v1027_v14, %v1378_v1  ;;  %v605_v19 = vadd.f32 %v1075_v15, %v1378_v1 }
  0xeb   :  { %843 = vst.msk [vmem:[%s1703_s3 + $0x170] sm:$0xff] %vm796_vm2, %v778_v9  ;;  %v684_v20 = vmul.f32 0.1, %v430_v12  ;;  %v716_v21 = vmul.f32 0.1, %v590_v13  ;;  %v439_v22 = vpop.f32.mrf.mxu0  ;;  %v599_v23 = vpop.f32.mrf.mxu1 }
  0xec   :  { %814 = vst.msk [vmem:[%s1703_s3 + $0x88] sm:$0xff] %vm796_vm2, %v749_v16  ;;  %846 = vst.msk [vmem:[%s1703_s3 + $0x188] sm:$0xff] %vm796_vm2, %v781_v17  ;;  %v687_v24 = vmul.f32 0.1, %v445_v18  ;;  %v719_v25 = vmul.f32 0.1, %v605_v19  ;;  %v440_v26 = vadd.f32 %v1378_v1, %v439_v22  ;;  %v600_v27 = vadd.f32 %v1378_v1, %v599_v23 }
  0xed   :  { %v748_v28 = vmax.f32 %v430_v12, %v684_v20  ;;  %v780_v29 = vmax.f32 %v590_v13, %v716_v21  ;;  %v1030_v30 = vpop.f32.mrf.mxu0  ;;  %v1078_v31 = vpop.f32.mrf.mxu1 }
  0xee   :  { %v751_v32 = vmax.f32 %v445_v18, %v687_v24  ;;  %v783_v33 = vmax.f32 %v605_v19, %v719_v25  ;;  %v686_v34 = vmul.f32 0.1, %v440_v26  ;;  %v718_v35 = vmul.f32 0.1, %v600_v27 }
  0xef   :  { %813 = vst.msk [vmem:[%s1703_s3 + $0x80] sm:$0xff] %vm796_vm2, %v748_v28  ;;  %845 = vst.msk [vmem:[%s1703_s3 + $0x180] sm:$0xff] %vm796_vm2, %v780_v29  ;;  %v455_v36 = vadd.f32 %v1030_v30, %v1378_v1  ;;  %v615_v37 = vadd.f32 %v1078_v31, %v1378_v1  ;;  %v449_v38 = vpop.f32.mrf.mxu0  ;;  %v609_v39 = vpop.f32.mrf.mxu1 }
  0xf0   :  { %816 = vst.msk [vmem:[%s1703_s3 + $0x98] sm:$0xff] %vm796_vm2, %v751_v32  ;;  %848 = vst.msk [vmem:[%s1703_s3 + $0x198] sm:$0xff] %vm796_vm2, %v783_v33  ;;  %v750_v40 = vmax.f32 %v440_v26, %v686_v34  ;;  %v782_v41 = vmax.f32 %v600_v27, %v718_v35  ;;  %v450_v42 = vadd.f32 %v1378_v1, %v449_v38 }
  0xf1   :  { %v610_v43 = vadd.f32 %v1378_v1, %v609_v39  ;;  %v689_v44 = vmul.f32 0.1, %v455_v36  ;;  %v721_v45 = vmul.f32 0.1, %v615_v37  ;;  %v1033_v46 = vpop.f32.mrf.mxu0  ;;  %v1081_v47 = vpop.f32.mrf.mxu1 }
  0xf2   :  { %815 = vst.msk [vmem:[%s1703_s3 + $0x90] sm:$0xff] %vm796_vm2, %v750_v40  ;;  %847 = vst.msk [vmem:[%s1703_s3 + $0x190] sm:$0xff] %vm796_vm2, %v782_v41  ;;  %v688_v48 = vmul.f32 0.1, %v450_v42  ;;  %v465_v50 = vadd.f32 %v1033_v46, %v1378_v1  ;;  %v625_v51 = vadd.f32 %v1081_v47, %v1378_v1 }
  0xf3   :  { %v720_v49 = vmul.f32 0.1, %v610_v43  ;;  %v753_v52 = vmax.f32 %v455_v36, %v689_v44  ;;  %v785_v53 = vmax.f32 %v615_v37, %v721_v45  ;;  %v459_v54 = vpop.f32.mrf.mxu0  ;;  %v619_v55 = vpop.f32.mrf.mxu1 }
  0xf4   :  { %v752_v56 = vmax.f32 %v450_v42, %v688_v48  ;;  %v691_v58 = vmul.f32 0.1, %v465_v50  ;;  %v723_v59 = vmul.f32 0.1, %v625_v51  ;;  %v460_v60 = vadd.f32 %v1378_v1, %v459_v54 }
  0xf5   :  { %v784_v57 = vmax.f32 %v610_v43, %v720_v49  ;;  %818 = vst.msk [vmem:[%s1703_s3 + $0xa8] sm:$0xff] %vm796_vm2, %v753_v52  ;;  %850 = vst.msk [vmem:[%s1703_s3 + $0x1a8] sm:$0xff] %vm796_vm2, %v785_v53  ;;  %v620_v61 = vadd.f32 %v1378_v1, %v619_v55  ;;  %v1036_v62 = vpop.f32.mrf.mxu0  ;;  %v1084_v63 = vpop.f32.mrf.mxu1 }
  0xf6   :  { %817 = vst.msk [vmem:[%s1703_s3 + $0xa0] sm:$0xff] %vm796_vm2, %v752_v56  ;;  %v755_v0 = vmax.f32 %v465_v50, %v691_v58  ;;  %v787_v2 = vmax.f32 %v625_v51, %v723_v59  ;;  %v475_v3 = vadd.f32 %v1036_v62, %v1378_v1  ;;  %v635_v4 = vadd.f32 %v1084_v63, %v1378_v1 }
  0xf7   :  { %849 = vst.msk [vmem:[%s1703_s3 + $0x1a0] sm:$0xff] %vm796_vm2, %v784_v57  ;;  %v690_v5 = vmul.f32 0.1, %v460_v60  ;;  %v722_v6 = vmul.f32 0.1, %v620_v61  ;;  %v469_v7 = vpop.f32.mrf.mxu0  ;;  %v629_v8 = vpop.f32.mrf.mxu1 }
  0xf8   :  { %820 = vst.msk [vmem:[%s1703_s3 + $0xb8] sm:$0xff] %vm796_vm2, %v755_v0  ;;  %852 = vst.msk [vmem:[%s1703_s3 + $0x1b8] sm:$0xff] %vm796_vm2, %v787_v2  ;;  %v693_v9 = vmul.f32 0.1, %v475_v3  ;;  %v725_v10 = vmul.f32 0.1, %v635_v4  ;;  %v470_v11 = vadd.f32 %v1378_v1, %v469_v7  ;;  %v630_v12 = vadd.f32 %v1378_v1, %v629_v8 }
  0xf9   :  { %v754_v13 = vmax.f32 %v460_v60, %v690_v5  ;;  %v786_v14 = vmax.f32 %v620_v61, %v722_v6  ;;  %v1039_v15 = vpop.f32.mrf.mxu0  ;;  %v1087_v16 = vpop.f32.mrf.mxu1 }
  0xfa   :  { %v757_v17 = vmax.f32 %v475_v3, %v693_v9  ;;  %v789_v18 = vmax.f32 %v635_v4, %v725_v10  ;;  %v692_v19 = vmul.f32 0.1, %v470_v11  ;;  %v724_v20 = vmul.f32 0.1, %v630_v12 }
  0xfb   :  { %819 = vst.msk [vmem:[%s1703_s3 + $0xb0] sm:$0xff] %vm796_vm2, %v754_v13  ;;  %851 = vst.msk [vmem:[%s1703_s3 + $0x1b0] sm:$0xff] %vm796_vm2, %v786_v14  ;;  %v485_v21 = vadd.f32 %v1039_v15, %v1378_v1  ;;  %v645_v22 = vadd.f32 %v1087_v16, %v1378_v1  ;;  %v479_v23 = vpop.f32.mrf.mxu0  ;;  %v639_v24 = vpop.f32.mrf.mxu1 }
  0xfc   :  { %822 = vst.msk [vmem:[%s1703_s3 + $0xc8] sm:$0xff] %vm796_vm2, %v757_v17  ;;  %854 = vst.msk [vmem:[%s1703_s3 + $0x1c8] sm:$0xff] %vm796_vm2, %v789_v18  ;;  %v756_v25 = vmax.f32 %v470_v11, %v692_v19  ;;  %v788_v26 = vmax.f32 %v630_v12, %v724_v20  ;;  %v480_v27 = vadd.f32 %v1378_v1, %v479_v23 }
  0xfd   :  { %v640_v28 = vadd.f32 %v1378_v1, %v639_v24  ;;  %v695_v29 = vmul.f32 0.1, %v485_v21  ;;  %v727_v30 = vmul.f32 0.1, %v645_v22  ;;  %v1042_v31 = vpop.f32.mrf.mxu0  ;;  %v1090_v32 = vpop.f32.mrf.mxu1 }
  0xfe   :  { %821 = vst.msk [vmem:[%s1703_s3 + $0xc0] sm:$0xff] %vm796_vm2, %v756_v25  ;;  %853 = vst.msk [vmem:[%s1703_s3 + $0x1c0] sm:$0xff] %vm796_vm2, %v788_v26  ;;  %v694_v33 = vmul.f32 0.1, %v480_v27  ;;  %v495_v35 = vadd.f32 %v1042_v31, %v1378_v1  ;;  %v655_v36 = vadd.f32 %v1090_v32, %v1378_v1 }
  0xff   :  { %v726_v34 = vmul.f32 0.1, %v640_v28  ;;  %v759_v37 = vmax.f32 %v485_v21, %v695_v29  ;;  %v791_v38 = vmax.f32 %v645_v22, %v727_v30  ;;  %v489_v39 = vpop.f32.mrf.mxu0  ;;  %v649_v40 = vpop.f32.mrf.mxu1 }
 0x100   :  { %v758_v41 = vmax.f32 %v480_v27, %v694_v33  ;;  %v697_v43 = vmul.f32 0.1, %v495_v35  ;;  %v729_v44 = vmul.f32 0.1, %v655_v36  ;;  %v490_v45 = vadd.f32 %v1378_v1, %v489_v39 }
 0x101   :  { %v790_v42 = vmax.f32 %v640_v28, %v726_v34  ;;  %824 = vst.msk [vmem:[%s1703_s3 + $0xd8] sm:$0xff] %vm796_vm2, %v759_v37  ;;  %856 = vst.msk [vmem:[%s1703_s3 + $0x1d8] sm:$0xff] %vm796_vm2, %v791_v38  ;;  %v650_v46 = vadd.f32 %v1378_v1, %v649_v40  ;;  %v1045_v47 = vpop.f32.mrf.mxu0  ;;  %v1093_v48 = vpop.f32.mrf.mxu1 }
 0x102   :  { %823 = vst.msk [vmem:[%s1703_s3 + $0xd0] sm:$0xff] %vm796_vm2, %v758_v41  ;;  %v761_v49 = vmax.f32 %v495_v35, %v697_v43  ;;  %v793_v50 = vmax.f32 %v655_v36, %v729_v44  ;;  %v505_v51 = vadd.f32 %v1045_v47, %v1378_v1  ;;  %v665_v52 = vadd.f32 %v1093_v48, %v1378_v1 }
 0x103   :  { %855 = vst.msk [vmem:[%s1703_s3 + $0x1d0] sm:$0xff] %vm796_vm2, %v790_v42  ;;  %v696_v53 = vmul.f32 0.1, %v490_v45  ;;  %v728_v54 = vmul.f32 0.1, %v650_v46  ;;  %v499_v55 = vpop.f32.mrf.mxu0  ;;  %v659_v56 = vpop.f32.mrf.mxu1 }
 0x104   :  { %826 = vst.msk [vmem:[%s1703_s3 + $0xe8] sm:$0xff] %vm796_vm2, %v761_v49  ;;  %858 = vst.msk [vmem:[%s1703_s3 + $0x1e8] sm:$0xff] %vm796_vm2, %v793_v50  ;;  %v699_v57 = vmul.f32 0.1, %v505_v51  ;;  %v731_v58 = vmul.f32 0.1, %v665_v52  ;;  %v500_v59 = vadd.f32 %v1378_v1, %v499_v55  ;;  %v660_v60 = vadd.f32 %v1378_v1, %v659_v56 }
 0x105   :  { %v760_v61 = vmax.f32 %v490_v45, %v696_v53  ;;  %v792_v62 = vmax.f32 %v650_v46, %v728_v54 }
 0x106   :  { %v763_v63 = vmax.f32 %v505_v51, %v699_v57  ;;  %v795_v0 = vmax.f32 %v665_v52, %v731_v58  ;;  %v698_v2 = vmul.f32 0.1, %v500_v59  ;;  %v730_v3 = vmul.f32 0.1, %v660_v60 }
 0x107   :  { %825 = vst.msk [vmem:[%s1703_s3 + $0xe0] sm:$0xff] %vm796_vm2, %v760_v61  ;;  %857 = vst.msk [vmem:[%s1703_s3 + $0x1e0] sm:$0xff] %vm796_vm2, %v792_v62 }
 0x108   :  { %828 = vst.msk [vmem:[%s1703_s3 + $0xf8] sm:$0xff] %vm796_vm2, %v763_v63  ;;  %860 = vst.msk [vmem:[%s1703_s3 + $0x1f8] sm:$0xff] %vm796_vm2, %v795_v0  ;;  %v762_v1 = vmax.f32 %v500_v59, %v698_v2  ;;  %v794_v4 = vmax.f32 %v660_v60, %v730_v3 }
 0x10a   :  { %827 = vst.msk [vmem:[%s1703_s3 + $0xf0] sm:$0xff] %vm796_vm2, %v762_v1  ;;  %859 = vst.msk [vmem:[%s1703_s3 + $0x1f0] sm:$0xff] %vm796_vm2, %v794_v4 }

</bundles_post_ra>
